<compile_context>
chip_gen: v7x
topology: tpu7x:2x2x1
jax: 0.10.0
libtpu: 0.0.40
codegen_flags: <defaults>
</compile_context>

<pallas_src>
import functools
import math

import jax
import jax.numpy as jnp
import numpy as np
from jax.experimental import pallas as pl
from jax.experimental.pallas import tpu as pltpu


# ----------------------------------------------------------------------------
# Pallas kernel: batched spectral filtering in the vec/Kronecker DFT form.
# ----------------------------------------------------------------------------
def _fourier_filter_kernel(kre_ref, kim_ref, x_ref, f1_ref, f2_ref,
                           x1_ref, x2_ref, w2_ref,
                           *, n, weigh_input, weigh_output):
    inv_n2 = 1.0 / float(n * n)

    Kre = kre_ref[...]          # (NN, NN) bf16   Re(F ⊗ F)
    Kim = kim_ref[...]          # (NN, NN) bf16   Im(F ⊗ F)
    x = x_ref[0]                # (TM, NN) f32    TM flattened images
    f1 = f1_ref[0]              # (1,  NN) f32    per-batch spectral filter 1
    f2 = f2_ref[0]              # (1,  NN) f32    per-batch spectral filter 2

    dot = lambda u, v: jnp.dot(u, v, preferred_element_type=jnp.float32)

    # Forward 2-D DFT via vec form: vec(FxF) = vec(x) @ (F⊗F)  (F⊗F symmetric).
    xb = x.astype(jnp.bfloat16)
    Xre = dot(xb, Kre)          # (TM, NN) f32
    Xim = dot(xb, Kim)

    # Per-image spectral power and weights (row-wise reductions, f32 VPU).
    power = Xre * Xre + Xim * Xim
    total = jnp.sum(power, axis=-1, keepdims=True)                       # (TM,1)
    w2 = total / jnp.sum(power * (f2 * f2), axis=-1, keepdims=True)      # (TM,1)

    # Real part of inverse 2-D DFT of (P + iQ):  (P@Kre + Q@Kim) / N².
    P1 = (Xre * f1).astype(jnp.bfloat16)
    Q1 = (Xim * f1).astype(jnp.bfloat16)
    P2 = (Xre * f2).astype(jnp.bfloat16)
    Q2 = (Xim * f2).astype(jnp.bfloat16)

    x1 = (dot(P1, Kre) + dot(Q1, Kim)) * inv_n2
    x2 = (dot(P2, Kre) + dot(Q2, Kim)) * inv_n2

    if weigh_input:
        w1 = total / jnp.sum(power * (f1 * f1), axis=-1, keepdims=True)
        x1 = x1 * w1
    if weigh_output:
        x2 = x2 * w2

    x1_ref[0] = x1
    x2_ref[0] = x2
    w2_ref[0] = w2


# ----------------------------------------------------------------------------
# Glue: filter construction (matches the PyTorch module's __init__/forward)
# ----------------------------------------------------------------------------
def _create_frequency_grid(n):
    freq = jnp.fft.fftfreq(n, d=1.0 / (2.0 * math.pi))
    fx, fy = jnp.meshgrid(freq, freq, indexing='ij')
    return jnp.sqrt(fx ** 2 + fy ** 2).astype(jnp.float32)


def _window(freq_grid, cutoff, params):
    wt = params['window_type']
    if wt == 'gaussian':
        return jnp.exp(-0.5 * (freq_grid / cutoff) ** 2)
    elif wt == 'rectangular':
        return jnp.where(freq_grid <= cutoff,
                         jnp.ones_like(freq_grid), jnp.zeros_like(freq_grid))
    elif wt == 'tukey':
        alpha = params['tukey_alpha']
        nf = freq_grid / cutoff
        taper = 0.5 * (1.0 + jnp.cos(jnp.pi * (nf - 1.0) / alpha))
        w = jnp.where(nf > 1.0, taper, jnp.ones_like(nf))
        w = jnp.where(nf > 1.0 + alpha, jnp.zeros_like(w), w)
        return w
    else:
        raise ValueError("Unknown window type.")


def build_filters(key, batch, params):
    """Per-batch random-cutoff lowpass/highpass filter pair, shape (B, N, N)."""
    n = params['img_size']
    c_lo = math.pi * params['cutoff_low']
    c_hi = math.pi * params['cutoff_high']
    freq_grid = _create_frequency_grid(n)

    cutoffs = (c_hi - c_lo) * jax.random.uniform(key, (batch,)) + c_lo
    kern = jax.vmap(lambda c: _window(freq_grid, c, params))(cutoffs)  # (B,N,N)

    if params['filter_type'] == 'lowpass':
        f1, f2 = kern, 1.0 - kern
    elif params['filter_type'] == 'highpass':
        f1, f2 = 1.0 - kern, kern
    elif params['filter_type'] == 'bandpass':
        raise NotImplementedError  # TODO(synk): bandpass unimplemented in reference module too
    else:
        raise ValueError("Unknown filter type.")

    if params['filter_shuffle']:
        half_b = batch // 2
        f1_new = jnp.concatenate([f2[:half_b], f1[half_b:]], axis=0)
        f2_new = jnp.concatenate([f1[:half_b], f2[half_b:]], axis=0)
        f1, f2 = f1_new, f2_new
    return f1.astype(jnp.float32), f2.astype(jnp.float32)


def _build_dft_kron(n):
    """Real/imag parts of the Kronecker 2-D DFT matrix F ⊗ F (row-major vec)."""
    idx = np.arange(n, dtype=np.float64)
    ang = (2.0 * math.pi / n) * np.outer(idx, idx)
    A = np.cos(ang)
    Bm = -np.sin(ang)
    Kre = np.kron(A, A) - np.kron(Bm, Bm)
    Kim = np.kron(A, Bm) + np.kron(Bm, A)
    return (jnp.asarray(Kre, dtype=jnp.bfloat16),
            jnp.asarray(Kim, dtype=jnp.bfloat16))


# ----------------------------------------------------------------------------
# Wrapper around pallas_call
# ----------------------------------------------------------------------------
def fourier_filter_forward(x, f1_b, f2_b, params, *, max_tm=512):
    """x: (B, C, T, H, W) float32; f1_b, f2_b: (B, H, W) float32."""
    B, C, T, H, W = x.shape
    N = params['img_size']
    assert H == N and W == N
    CT = C * T
    NN = N * N

    # Lane-dense views: each image is one row of length N*N.
    x_flat = x.reshape(B, CT, NN).astype(jnp.float32)
    f1_flat = f1_b.reshape(B, 1, NN).astype(jnp.float32)
    f2_flat = f2_b.reshape(B, 1, NN).astype(jnp.float32)

    Kre, Kim = _build_dft_kron(N)

    # Images per block: as large as possible (amortize per-step overhead),
    # multiple of 8 unless it covers the whole C*T axis.  max_tm=512 keeps
    # double-buffered blocks a few MiB — well under v7x's 64 MiB VMEM per TC.
    TM = CT if CT <= max_tm else max_tm
    grid = (B, pl.cdiv(CT, TM))

    kernel = functools.partial(
        _fourier_filter_kernel, n=N,
        weigh_input=params['spectrally_weigh_input'],
        weigh_output=params['spectrally_weigh_output'])

    img_spec = pl.BlockSpec((1, TM, NN), lambda b, j: (b, j, 0))
    filt_spec = pl.BlockSpec((1, 1, NN), lambda b, j: (b, 0, 0))
    dft_spec = pl.BlockSpec((NN, NN), lambda b, j: (0, 0))
    w2_spec = pl.BlockSpec((1, TM, 1), lambda b, j: (b, j, 0))

    M = B * CT
    flops = 6 * M * NN * NN * 2
    bytes_accessed = (M * NN * 4            # x in
                      + 2 * NN * NN * 2     # DFT matrices (bf16)
                      + 2 * B * NN * 4      # per-batch filters
                      + 2 * M * NN * 4      # x1, x2 out
                      + M * 4)              # w2 out (scalar per image)

    x1f, x2f, w2f = pl.pallas_call(
        kernel,
        out_shape=(jax.ShapeDtypeStruct((B, CT, NN), jnp.float32),
                   jax.ShapeDtypeStruct((B, CT, NN), jnp.float32),
                   jax.ShapeDtypeStruct((B, CT, 1), jnp.float32)),
        grid_spec=pltpu.PrefetchScalarGridSpec(
            num_scalar_prefetch=0,
            grid=grid,
            in_specs=[dft_spec, dft_spec, img_spec, filt_spec, filt_spec],
            out_specs=[img_spec, img_spec, w2_spec],
        ),
        compiler_params=pltpu.CompilerParams(
            dimension_semantics=("parallel", "parallel")),
        cost_estimate=pl.CostEstimate(
            flops=flops, transcendentals=0, bytes_accessed=bytes_accessed),
    )(Kre, Kim, x_flat, f1_flat, f2_flat)

    x1 = x1f.reshape(B, C, T, N, N)
    x2 = x2f.reshape(B, C, T, N, N)
    if params['use_spectral_weights']:
        w2 = jnp.broadcast_to(w2f.reshape(B, C, T, 1, 1), (B, C, T, N, N))
        return x1, x2, w2
    return x1, x2


# ----------------------------------------------------------------------------
# Pure-JAX reference (mirrors the PyTorch forward) for validation
# ----------------------------------------------------------------------------
def reference_forward(x, f1_b, f2_b, params):
    f1 = jnp.broadcast_to(f1_b[:, None, None], x.shape)
    f2 = jnp.broadcast_to(f2_b[:, None, None], x.shape)
    xf = jnp.fft.fft2(x)
    xf1 = xf * f1
    xf2 = xf * f2
    x1 = jnp.fft.ifft2(xf1).real
    x2 = jnp.fft.ifft2(xf2).real
    tot = jnp.sum(jnp.abs(xf) ** 2, axis=(-1, -2))
    w1 = (tot / jnp.sum(jnp.abs(xf1) ** 2, axis=(-1, -2)))[..., None, None]
    w2 = (tot / jnp.sum(jnp.abs(xf2) ** 2, axis=(-1, -2)))[..., None, None]
    w2e = jnp.broadcast_to(w2, x.shape)
    if params['spectrally_weigh_input']:
        x1 = x1 * w1
    if params['spectrally_weigh_output']:
        x2 = x2 * w2
    if params['use_spectral_weights']:
        return x1, x2, w2e
    return x1, x2


if __name__ == "__main__":
    params = dict(
        img_size=16,
        cutoff_low=0.25,
        cutoff_high=0.75,
        filter_shuffle=True,
        filter_type='lowpass',
        window_type='gaussian',
        tukey_alpha=0.5,
        use_spectral_weights=True,
        spectrally_weigh_input=True,
        spectrally_weigh_output=True,
    )

    B, C, T, N = 2, 3, 4, params['img_size']
    key = jax.random.PRNGKey(0)
    k_x, k_f = jax.random.split(key)
    x = jax.random.normal(k_x, (B, C, T, N, N), dtype=jnp.float32)

    f1_b, f2_b = build_filters(k_f, B, params)

    out = fourier_filter_forward(x, f1_b, f2_b, params)
    out = jax.block_until_ready(out)

    ref = reference_forward(x, f1_b, f2_b, params)
    for o, r in zip(out, ref):
        o = np.asarray(o)
        r = np.asarray(r)
        denom = np.max(np.abs(r)) + 1e-6
        assert np.max(np.abs(o - r)) / denom < 1e-2, "mismatch vs reference"

    print("KERNEL_OK")
</pallas_src>

<mosaic_0001>
module attributes {stable_mosaic.version = 11 : i64} {
  func.func @_fourier_filter_kernel(%arg0: i32, %arg1: i32, %arg2: memref<256x256xbf16, #tpu.memory_space<vmem>>, %arg3: memref<256x256xbf16, #tpu.memory_space<vmem>>, %arg4: memref<1x12x256xf32, #tpu.memory_space<vmem>>, %arg5: memref<1x1x256xf32, #tpu.memory_space<vmem>>, %arg6: memref<1x1x256xf32, #tpu.memory_space<vmem>>, %arg7: memref<1x12x256xf32, #tpu.memory_space<vmem>>, %arg8: memref<1x12x256xf32, #tpu.memory_space<vmem>>, %arg9: memref<1x12x1xf32, #tpu.memory_space<vmem>>) attributes {dimension_semantics = [#tpu.dimension_semantics<parallel>, #tpu.dimension_semantics<parallel>], iteration_bounds = array<i64: 2, 1>, scalar_prefetch = 0 : i64, scratch_operands = 0 : i64, tpu.core_type = #tpu.core_type<tc>, window_params = [{pipeline_mode = #tpu.pipeline_mode<synchronous>, transform_indices = @transform_0, window_bounds = array<i64: 256, 256>}, {pipeline_mode = #tpu.pipeline_mode<synchronous>, transform_indices = @transform_1, window_bounds = array<i64: 256, 256>}, {transform_indices = @transform_2, window_bounds = array<i64: 1, 12, 256>}, {transform_indices = @transform_3, window_bounds = array<i64: 1, 1, 256>}, {transform_indices = @transform_4, window_bounds = array<i64: 1, 1, 256>}, {transform_indices = @transform_5, window_bounds = array<i64: 1, 12, 256>}, {transform_indices = @transform_6, window_bounds = array<i64: 1, 12, 256>}, {transform_indices = @transform_7, window_bounds = array<i64: 1, 12, 1>}]} {
    %c0 = arith.constant 0 : index
    %c0_0 = arith.constant 0 : index
    %0 = vector.load %arg2[%c0, %c0_0] : memref<256x256xbf16, #tpu.memory_space<vmem>>, vector<256x256xbf16>
    %c0_1 = arith.constant 0 : index
    %c0_2 = arith.constant 0 : index
    %1 = vector.load %arg3[%c0_1, %c0_2] : memref<256x256xbf16, #tpu.memory_space<vmem>>, vector<256x256xbf16>
    %c0_3 = arith.constant 0 : index
    %c0_4 = arith.constant 0 : index
    %c0_5 = arith.constant 0 : index
    %2 = vector.load %arg4[%c0_3, %c0_4, %c0_5] : memref<1x12x256xf32, #tpu.memory_space<vmem>>, vector<1x12x256xf32>
    %3 = vector.shape_cast %2 : vector<1x12x256xf32> to vector<12x256xf32>
    %c0_6 = arith.constant 0 : index
    %c0_7 = arith.constant 0 : index
    %c0_8 = arith.constant 0 : index
    %4 = vector.load %arg5[%c0_6, %c0_7, %c0_8] : memref<1x1x256xf32, #tpu.memory_space<vmem>>, vector<1x1x256xf32>
    %5 = vector.shape_cast %4 : vector<1x1x256xf32> to vector<1x256xf32>
    %c0_9 = arith.constant 0 : index
    %c0_10 = arith.constant 0 : index
    %c0_11 = arith.constant 0 : index
    %6 = vector.load %arg6[%c0_9, %c0_10, %c0_11] : memref<1x1x256xf32, #tpu.memory_space<vmem>>, vector<1x1x256xf32>
    %7 = vector.shape_cast %6 : vector<1x1x256xf32> to vector<1x256xf32>
    %8 = arith.truncf %3 : vector<12x256xf32> to vector<12x256xbf16>
    %cst = arith.constant dense<0.000000e+00> : vector<12x256xf32>
    %9 = tpu.matmul %8, %0, %cst {dimension_numbers = #tpu.dot_dimension_numbers<[1], [0], [0], [1], [0, 0, 1, 1], [], []>} : vector<12x256xbf16>, vector<256x256xbf16>, vector<12x256xf32> -> vector<12x256xf32>
    %cst_12 = arith.constant dense<0.000000e+00> : vector<12x256xf32>
    %10 = tpu.matmul %8, %1, %cst_12 {dimension_numbers = #tpu.dot_dimension_numbers<[1], [0], [0], [1], [0, 0, 1, 1], [], []>} : vector<12x256xbf16>, vector<256x256xbf16>, vector<12x256xf32> -> vector<12x256xf32>
    %11 = arith.mulf %9, %9 : vector<12x256xf32>
    %12 = arith.mulf %10, %10 : vector<12x256xf32>
    %13 = arith.addf %11, %12 : vector<12x256xf32>
    %cst_13 = arith.constant dense<0.000000e+00> : vector<12xf32>
    %14 = vector.multi_reduction <add>, %13, %cst_13 [1] : vector<12x256xf32> to vector<12xf32>
    %15 = vector.shape_cast %14 : vector<12xf32> to vector<12x1xf32>
    %16 = arith.mulf %7, %7 : vector<1x256xf32>
    %17 = vector.broadcast %16 : vector<1x256xf32> to vector<12x256xf32>
    %18 = arith.mulf %13, %17 : vector<12x256xf32>
    %cst_14 = arith.constant dense<0.000000e+00> : vector<12xf32>
    %19 = vector.multi_reduction <add>, %18, %cst_14 [1] : vector<12x256xf32> to vector<12xf32>
    %20 = vector.shape_cast %19 : vector<12xf32> to vector<12x1xf32>
    %21 = arith.divf %15, %20 : vector<12x1xf32>
    %22 = vector.broadcast %5 : vector<1x256xf32> to vector<12x256xf32>
    %23 = arith.mulf %9, %22 : vector<12x256xf32>
    %24 = arith.truncf %23 : vector<12x256xf32> to vector<12x256xbf16>
    %25 = vector.broadcast %5 : vector<1x256xf32> to vector<12x256xf32>
    %26 = arith.mulf %10, %25 : vector<12x256xf32>
    %27 = arith.truncf %26 : vector<12x256xf32> to vector<12x256xbf16>
    %28 = vector.broadcast %7 : vector<1x256xf32> to vector<12x256xf32>
    %29 = arith.mulf %9, %28 : vector<12x256xf32>
    %30 = arith.truncf %29 : vector<12x256xf32> to vector<12x256xbf16>
    %31 = vector.broadcast %7 : vector<1x256xf32> to vector<12x256xf32>
    %32 = arith.mulf %10, %31 : vector<12x256xf32>
    %33 = arith.truncf %32 : vector<12x256xf32> to vector<12x256xbf16>
    %cst_15 = arith.constant dense<0.000000e+00> : vector<12x256xf32>
    %34 = tpu.matmul %24, %0, %cst_15 {dimension_numbers = #tpu.dot_dimension_numbers<[1], [0], [0], [1], [0, 0, 1, 1], [], []>} : vector<12x256xbf16>, vector<256x256xbf16>, vector<12x256xf32> -> vector<12x256xf32>
    %cst_16 = arith.constant dense<0.000000e+00> : vector<12x256xf32>
    %35 = tpu.matmul %27, %1, %cst_16 {dimension_numbers = #tpu.dot_dimension_numbers<[1], [0], [0], [1], [0, 0, 1, 1], [], []>} : vector<12x256xbf16>, vector<256x256xbf16>, vector<12x256xf32> -> vector<12x256xf32>
    %36 = arith.addf %34, %35 : vector<12x256xf32>
    %cst_17 = arith.constant 3.906250e-03 : f32
    %37 = vector.broadcast %cst_17 : f32 to vector<12x256xf32>
    %38 = arith.mulf %36, %37 : vector<12x256xf32>
    %cst_18 = arith.constant dense<0.000000e+00> : vector<12x256xf32>
    %39 = tpu.matmul %30, %0, %cst_18 {dimension_numbers = #tpu.dot_dimension_numbers<[1], [0], [0], [1], [0, 0, 1, 1], [], []>} : vector<12x256xbf16>, vector<256x256xbf16>, vector<12x256xf32> -> vector<12x256xf32>
    %cst_19 = arith.constant dense<0.000000e+00> : vector<12x256xf32>
    %40 = tpu.matmul %33, %1, %cst_19 {dimension_numbers = #tpu.dot_dimension_numbers<[1], [0], [0], [1], [0, 0, 1, 1], [], []>} : vector<12x256xbf16>, vector<256x256xbf16>, vector<12x256xf32> -> vector<12x256xf32>
    %41 = arith.addf %39, %40 : vector<12x256xf32>
    %cst_20 = arith.constant 3.906250e-03 : f32
    %42 = vector.broadcast %cst_20 : f32 to vector<12x256xf32>
    %43 = arith.mulf %41, %42 : vector<12x256xf32>
    %44 = arith.mulf %5, %5 : vector<1x256xf32>
    %45 = vector.broadcast %44 : vector<1x256xf32> to vector<12x256xf32>
    %46 = arith.mulf %13, %45 : vector<12x256xf32>
    %cst_21 = arith.constant dense<0.000000e+00> : vector<12xf32>
    %47 = vector.multi_reduction <add>, %46, %cst_21 [1] : vector<12x256xf32> to vector<12xf32>
    %48 = vector.shape_cast %47 : vector<12xf32> to vector<12x1xf32>
    %49 = arith.divf %15, %48 : vector<12x1xf32>
    %50 = vector.broadcast %49 : vector<12x1xf32> to vector<12x256xf32>
    %51 = arith.mulf %38, %50 : vector<12x256xf32>
    %52 = vector.broadcast %21 : vector<12x1xf32> to vector<12x256xf32>
    %53 = arith.mulf %43, %52 : vector<12x256xf32>
    %c0_22 = arith.constant 0 : index
    %c0_23 = arith.constant 0 : index
    %c0_24 = arith.constant 0 : index
    %54 = vector.load %arg7[%c0_22, %c0_23, %c0_24] : memref<1x12x256xf32, #tpu.memory_space<vmem>>, vector<1x12x256xf32>
    %55 = vector.shape_cast %54 : vector<1x12x256xf32> to vector<12x256xf32>
    %56 = vector.shape_cast %51 : vector<12x256xf32> to vector<1x12x256xf32>
    tpu.vector_store %arg7[%c0_22, %c0_23, %c0_24], %56 {strides = array<i32>} : memref<1x12x256xf32, #tpu.memory_space<vmem>>, vector<1x12x256xf32>,
    %c0_25 = arith.constant 0 : index
    %c0_26 = arith.constant 0 : index
    %c0_27 = arith.constant 0 : index
    %57 = vector.load %arg8[%c0_25, %c0_26, %c0_27] : memref<1x12x256xf32, #tpu.memory_space<vmem>>, vector<1x12x256xf32>
    %58 = vector.shape_cast %57 : vector<1x12x256xf32> to vector<12x256xf32>
    %59 = vector.shape_cast %53 : vector<12x256xf32> to vector<1x12x256xf32>
    tpu.vector_store %arg8[%c0_25, %c0_26, %c0_27], %59 {strides = array<i32>} : memref<1x12x256xf32, #tpu.memory_space<vmem>>, vector<1x12x256xf32>,
    %c0_28 = arith.constant 0 : index
    %c0_29 = arith.constant 0 : index
    %c0_30 = arith.constant 0 : index
    %60 = vector.load %arg9[%c0_28, %c0_29, %c0_30] : memref<1x12x1xf32, #tpu.memory_space<vmem>>, vector<1x12x1xf32>
    %61 = vector.shape_cast %60 : vector<1x12x1xf32> to vector<12x1xf32>
    %62 = vector.shape_cast %21 : vector<12x1xf32> to vector<1x12x1xf32>
    tpu.vector_store %arg9[%c0_28, %c0_29, %c0_30], %62 {strides = array<i32>} : memref<1x12x1xf32, #tpu.memory_space<vmem>>, vector<1x12x1xf32>,
    return
  }
  func.func @transform_0(%arg0: i32, %arg1: i32) -> (i32, i32) {
    %c0_i32 = arith.constant 0 : i32
    %c0_i32_0 = arith.constant 0 : i32
    %c0_i32_1 = arith.constant 0 : i32
    return %c0_i32, %c0_i32_0 : i32, i32
  }
  func.func @transform_1(%arg0: i32, %arg1: i32) -> (i32, i32) {
    %c0_i32 = arith.constant 0 : i32
    %c0_i32_0 = arith.constant 0 : i32
    %c0_i32_1 = arith.constant 0 : i32
    return %c0_i32, %c0_i32_0 : i32, i32
  }
  func.func @transform_2(%arg0: i32, %arg1: i32) -> (i32, i32, i32) {
    %c0_i32 = arith.constant 0 : i32
    %c0_i32_0 = arith.constant 0 : i32
    return %arg0, %arg1, %c0_i32 : i32, i32, i32
  }
  func.func @transform_3(%arg0: i32, %arg1: i32) -> (i32, i32, i32) {
    %c0_i32 = arith.constant 0 : i32
    %c0_i32_0 = arith.constant 0 : i32
    %c0_i32_1 = arith.constant 0 : i32
    return %arg0, %c0_i32, %c0_i32_0 : i32, i32, i32
  }
  func.func @transform_4(%arg0: i32, %arg1: i32) -> (i32, i32, i32) {
    %c0_i32 = arith.constant 0 : i32
    %c0_i32_0 = arith.constant 0 : i32
    %c0_i32_1 = arith.constant 0 : i32
    return %arg0, %c0_i32, %c0_i32_0 : i32, i32, i32
  }
  func.func @transform_5(%arg0: i32, %arg1: i32) -> (i32, i32, i32) {
    %c0_i32 = arith.constant 0 : i32
    %c0_i32_0 = arith.constant 0 : i32
    return %arg0, %arg1, %c0_i32 : i32, i32, i32
  }
  func.func @transform_6(%arg0: i32, %arg1: i32) -> (i32, i32, i32) {
    %c0_i32 = arith.constant 0 : i32
    %c0_i32_0 = arith.constant 0 : i32
    return %arg0, %arg1, %c0_i32 : i32, i32, i32
  }
  func.func @transform_7(%arg0: i32, %arg1: i32) -> (i32, i32, i32) {
    %c0_i32 = arith.constant 0 : i32
    %c0_i32_0 = arith.constant 0 : i32
    return %arg0, %arg1, %c0_i32 : i32, i32, i32
  }
}

</mosaic_0001>

<bundles_post_ra>
// kernel: tpu_custom_call.1
= control target key start
LH: loop header
LB: loop body
LE: loop exit
PB: predicated region body
PF: predicated region fallthrough
CT: control target
= control target key end

     0   :  { %13 = vsyncpa [#allocation3], 0  ;;  %s2353_s0 = inlined_call_operand.hbm [shape: bf16[256,256], index: 0, kind: input, shape index: {}]   ;;  %s2354_s1 = inlined_call_operand.hbm [shape: bf16[256,256], index: 1, kind: input, shape index: {}]   ;;  %s2355_s2 = inlined_call_operand.vmem [shape: f32[2,12,256], index: 2, kind: input, shape index: {}]   ;;  %s2356_s3 = inlined_call_operand.vmem [shape: f32[2,1,256], index: 3, kind: input, shape index: {}]   ;;  %s2357_s4 = inlined_call_operand.vmem [shape: f32[2,1,256], index: 4, kind: input, shape index: {}]   ;;  %s2358_s5 = inlined_call_operand.vmem [shape: f32[2,12,256], index: 5, kind: output, shape index: {0}]   ;;  %s2359_s6 = inlined_call_operand.vmem [shape: f32[2,12,256], index: 6, kind: output, shape index: {1}]   ;;  %s2360_s7 = inlined_call_operand.vmem [shape: f32[2,12,1], index: 7, kind: output, shape index: {2}]  }
   0x1   :  { %14 = vsyncpa [#allocation5], 0  ;;  %s1865_s24 = smov 0   ;;  %s1867_s25 = smov 0  }
   0x2   :  { %s1869_s26 = smov 0  }
   0x3 LB: > { %s1485_s27 = sadd.s32 4294967295, %s1819_s26   ;;  %s32_s28 = sadd.s32 1, %s1815_s25  ;;  %s1819_s26 = sphi %s1869_s26, %s20_s26   ;;  %s1815_s25 = sphi %s1867_s25, %s2417_s25   ;;  %s1811_s24 = sphi %s1865_s24, %s2416_s24  }
   0x4   : > { %p34_p0 = scmp.ge.s32.totalorder %s32_s28, 2  ;;  %p1487_p1 = scmp.ge.s32.totalorder %s1819_s26, 1 }
   0x5   : > { %p243_p2 = scmp.lt.s32.totalorder %s1819_s26, 3  ;;  %p1890_p4 = scmp.eq.s32.totalorder %s1485_s27, 0 }
   0x6   : > { %s2419_s28 = smov (%p34_p0, %s32_s28), 0  ;;  %s1821_s8 = smov [#allocation2]  }
   0x7   : > { %p1886_p3 = pnand %p1487_p1, %p243_p2  ;;  %s255_s9 = sshll.u32 %s1821_s8, 4  ;;  %s256_s9 = int_to_ptr.vmem [resolvable:$true] %s255_s9 }
   0x8   : > { %s2386_s30 = scalar_select %p1890_p4, 1, 0 }
   0x9   : > { %s2385_s29 = scalar_select %p1886_p3, 1, 0 }
   0xa   : > { %p1590_p5 = pneg %p1886_p3  ;;  %s1822_s11 = smov [#allocation4]  }
   0xb   : > { %s268_s12 = sshll.u32 %s1822_s11, 4  ;;  %s1733_s15 = scalar_lea.hbm %s2353_s0, 4096  ;;  %s1902_s12 = int_to_ptr.vmem [resolvable:$true] %s268_s12 }
   0xc   : > { %p1898_p6 = pnand %p1890_p4, %p1590_p5  ;;  %p1734_p7 = scmp.ne.s32.totalorder %s2353_s0, %s1733_s15 }
   0xd   : > { %p1740_p11 = scmp.lt.u32.totalorder %s1733_s15, %s2353_s0 }
   0xe   : > { %p1735_p8 = pneg %p1898_p6 }
  0x10   : > { %p1736_p9 = pnand %p1735_p8, %p1734_p7 }
  0x12   : > { %p1737_p10 = pneg %p1736_p9 }
  0x14   : > { %p1742_p12 = pnand %p1740_p11, %p1737_p10 }
  0x16   : > { %1745 = shalt.err (!%p1742_p12)
}
  0x17   : > { %s1746_s20 = scalar_lea.vmem %s256_s9, 4096  ;;  %p1754_p2 = scmp.lt.s32.totalorder %s256_s9, %s256_s9 }
  0x18   : > { %p1747_p13 = scmp.ne.s32.totalorder %s256_s9, %s1746_s20  ;;  %p1755_p5 = scmp.lt.s32.totalorder %s1746_s20, %s1746_s20 }
  0x1a   : > { %p1749_p0 = pnand %p1747_p13, %p1735_p8  ;;  %p1756_p4 = por %p1755_p5, %p1754_p2 }
  0x1c   : > { %p1750_p1 = pneg %p1749_p0 }
  0x1e   : > { %p1757_p3 = pnand %p1756_p4, %p1750_p1 }
  0x20   : > { %1760 = shalt.err (!%p1757_p3)
}
  0x21   : > { %s1823_s21 = smov 128   ;;  %s1824_s22 = smov 8  }
  0x22   : > { %1593 = dma.hbm_to_vmem [thread:$0]  (!%p1898_p6), %s2353_s0, 4096, %s256_s9, [#allocation3], %s1823_s21, %s1823_s21, %s1824_s22  }
  0x23   : > { %s1761_s13 = scalar_lea.hbm %s2354_s1, 4096 }
  0x24   : > { %p1762_p7 = scmp.ne.s32.totalorder %s2354_s1, %s1761_s13  ;;  %p1768_p9 = scmp.lt.u32.totalorder %s1761_s13, %s2354_s1 }
  0x26   : > { %p1764_p3 = pnand %p1762_p7, %p1735_p8 }
  0x28   : > { %p1765_p4 = pneg %p1764_p3 }
  0x2a   : > { %p1770_p10 = pnand %p1768_p9, %p1765_p4 }
  0x2c   : > { %1773 = shalt.err (!%p1770_p10)
}
  0x2d   : > { %s1774_s9 = scalar_lea.vmem %s1902_s12, 4096  ;;  %p1782_p0 = scmp.lt.s32.totalorder %s1902_s12, %s1902_s12 }
  0x2e   : > { %p1775_p11 = scmp.ne.s32.totalorder %s1902_s12, %s1774_s9  ;;  %p1783_p1 = scmp.lt.s32.totalorder %s1774_s9, %s1774_s9 }
  0x30   : > { %p1777_p12 = pnand %p1775_p11, %p1735_p8  ;;  %p1784_p2 = por %p1783_p1, %p1782_p0 }
  0x32   : > { %p1778_p13 = pneg %p1777_p12 }
  0x34   : > { %p1785_p5 = pnand %p1784_p2, %p1778_p13 }
  0x36   : > { %1788 = shalt.err (!%p1785_p5)
}
  0x37   : > { %1596 = dma.hbm_to_vmem [thread:$0]  (!%p1898_p6), %s2354_s1, 4096, %s1902_s12, [#allocation5], %s1823_s21, %s1823_s21, %s1824_s22  }
  0x38   : > { %p2388_p7 = scmp.ne.s32.totalorder %s2385_s29, 0 }
  0x3a   : > { %312 = sbr.rel (%p2388_p7) target bundleno = 643 (0x283), region = 40 }
  0x41   : > { %p2389_p3 = scmp.ne.s32.totalorder %s2386_s30, 0 }
  0x43   : > { %1802 = dma.done.wait (%p2389_p3), [#allocation3], 4096  }
  0x44   : > { %1804 = vsyncadd (%p2389_p3), [#allocation3], 4294963200 }
  0x45   : > { %1806 = dma.done.wait (%p2389_p3), [#allocation5], 4096  }
  0x46   : > { %1808 = vsyncadd (%p2389_p3), [#allocation5], 4294963200  ;;  %v1961_v0 = vld [vmem:[#allocation2 + $0x4] ss:$8 sps:$4 sm:$0xff]   ;;  %v1966_v2 = vld [vmem:[#allocation2] ss:$8 sps:$4 sm:$0xff]  }
  0x47   : > { %v1963_v1 = vld [vmem:[#allocation4 + $0x4] ss:$8 sps:$4 sm:$0xff]   ;;  %668 = vmatprep.subr.bf16.mxu0 %v1961_v0  ;;  %v1968_v3 = vld [vmem:[#allocation4] ss:$8 sps:$4 sm:$0xff]   ;;  %v1971_v4 = vld [vmem:[#allocation2 + $0x14] ss:$8 sps:$4 sm:$0xff]  }
  0x48   : > { %871 = vmatprep.subr.bf16.mxu1 %v1963_v1  ;;  %669 = vmatpush1.bf16.msra.mxu0 %v1966_v2  ;;  %v1975_v5 = vld [vmem:[#allocation4 + $0x14] ss:$8 sps:$4 sm:$0xff]   ;;  %v1977_v6 = vld [vmem:[#allocation2 + $0x10] ss:$8 sps:$4 sm:$0xff]   ;;  %v1983_v8 = vld [vmem:[#allocation2 + $0x24] ss:$8 sps:$4 sm:$0xff]  }
  0x49   : > { %872 = vmatpush1.bf16.msra.mxu1 %v1968_v3  ;;  %670 = vmatprep.subr.bf16.mxu0 %v1971_v4  ;;  %v1980_v7 = vld [vmem:[#allocation4 + $0x10] ss:$8 sps:$4 sm:$0xff]   ;;  %v1985_v9 = vld [vmem:[#allocation4 + $0x24] ss:$8 sps:$4 sm:$0xff]   ;;  %v1987_v10 = vld [vmem:[#allocation2 + $0x20] ss:$8 sps:$4 sm:$0xff]  }
  0x4a   : > { %873 = vmatprep.subr.bf16.mxu1 %v1975_v5  ;;  %v1989_v11 = vld [vmem:[#allocation4 + $0x20] ss:$8 sps:$4 sm:$0xff]   ;;  %v1993_v12 = vld [vmem:[#allocation2 + $0x34] ss:$8 sps:$4 sm:$0xff]   ;;  %v1999_v14 = vld [vmem:[#allocation2 + $0x30] ss:$8 sps:$4 sm:$0xff]  }
  0x4b   : > { %v1997_v13 = vld [vmem:[#allocation4 + $0x34] ss:$8 sps:$4 sm:$0xff]   ;;  %v2003_v15 = vld [vmem:[#allocation4 + $0x30] ss:$8 sps:$4 sm:$0xff]   ;;  %v2005_v16 = vld [vmem:[#allocation2 + $0x44] ss:$8 sps:$4 sm:$0xff]  }
  0x4c   : > { %671 = vmatpush1.bf16.msra.mxu0 %v1977_v6  ;;  %v2009_v17 = vld [vmem:[#allocation4 + $0x44] ss:$8 sps:$4 sm:$0xff]   ;;  %v2011_v18 = vld [vmem:[#allocation2 + $0x40] ss:$8 sps:$4 sm:$0xff]   ;;  %v2017_v20 = vld [vmem:[#allocation2 + $0x54] ss:$8 sps:$4 sm:$0xff]  }
  0x4d   : > { %874 = vmatpush1.bf16.msra.mxu1 %v1980_v7  ;;  %672 = vmatprep.subr.bf16.mxu0 %v1983_v8  ;;  %v2013_v19 = vld [vmem:[#allocation4 + $0x40] ss:$8 sps:$4 sm:$0xff]   ;;  %v2021_v21 = vld [vmem:[#allocation4 + $0x54] ss:$8 sps:$4 sm:$0xff]   ;;  %v2023_v22 = vld [vmem:[#allocation2 + $0x50] ss:$8 sps:$4 sm:$0xff]  }
  0x4e   : > { %875 = vmatprep.subr.bf16.mxu1 %v1985_v9  ;;  %v2027_v23 = vld [vmem:[#allocation4 + $0x50] ss:$8 sps:$4 sm:$0xff]   ;;  %v2029_v24 = vld [vmem:[#allocation2 + $0x64] ss:$8 sps:$4 sm:$0xff]   ;;  %v2035_v26 = vld [vmem:[#allocation2 + $0x60] ss:$8 sps:$4 sm:$0xff]  }
  0x4f   : > { %v2033_v25 = vld [vmem:[#allocation4 + $0x64] ss:$8 sps:$4 sm:$0xff]   ;;  %v2037_v27 = vld [vmem:[#allocation4 + $0x60] ss:$8 sps:$4 sm:$0xff]   ;;  %v2041_v28 = vld [vmem:[#allocation2 + $0x74] ss:$8 sps:$4 sm:$0xff]  }
  0x50   : > { %673 = vmatpush1.bf16.msra.mxu0 %v1987_v10  ;;  %v2045_v29 = vld [vmem:[#allocation4 + $0x74] ss:$8 sps:$4 sm:$0xff]   ;;  %v2047_v30 = vld [vmem:[#allocation2 + $0x70] ss:$8 sps:$4 sm:$0xff]   ;;  %v2053_v32 = vld [vmem:[#allocation2 + $0x84] ss:$8 sps:$4 sm:$0xff]  }
  0x51   : > { %876 = vmatpush1.bf16.msra.mxu1 %v1989_v11  ;;  %674 = vmatprep.subr.bf16.mxu0 %v1993_v12  ;;  %v2051_v31 = vld [vmem:[#allocation4 + $0x70] ss:$8 sps:$4 sm:$0xff]   ;;  %p386_p6 = scmp.lt.s32.totalorder %s1811_s24, 1  ;;  %v2058_v33 = vld [vmem:[#allocation4 + $0x84] ss:$8 sps:$4 sm:$0xff]   ;;  %vm929_vm0 = vcmask 1043456  }
  0x52   : > { %877 = vmatprep.subr.bf16.mxu1 %v1997_v13  ;;  %v2060_v34 = vld [vmem:[#allocation2 + $0x80] ss:$8 sps:$4 sm:$0xff]   ;;  %v2066_v36 = vld [vmem:[#allocation2 + $0x94] ss:$8 sps:$4 sm:$0xff]   ;;  %v2075_v38 = vld [vmem:[#allocation2 + $0x90] ss:$8 sps:$4 sm:$0xff]  }
  0x53   : > { %v2062_v35 = vld [vmem:[#allocation4 + $0x80] ss:$8 sps:$4 sm:$0xff]   ;;  %s2421_s24 = smov (!%p386_p6, %s1811_s24), 1  ;;  %v2073_v37 = vld [vmem:[#allocation4 + $0x94] ss:$8 sps:$4 sm:$0xff]   ;;  %vm1233_vm1 = vcmask 7168  }
  0x54   : > { %675 = vmatpush1.bf16.msra.mxu0 %v1999_v14  ;;  %v2079_v39 = vld [vmem:[#allocation4 + $0x90] ss:$8 sps:$4 sm:$0xff]   ;;  %v2081_v40 = vld [vmem:[#allocation2 + $0xa4] ss:$8 sps:$4 sm:$0xff]   ;;  %s2084_s29 = sshll.u32 %s2421_s24, 5  ;;  %s1496_s20 = sshll.u32 %s2421_s24, 1 }
  0x55   : > { %878 = vmatpush1.bf16.msra.mxu1 %v2003_v15  ;;  %676 = vmatprep.subr.bf16.mxu0 %v2005_v16  ;;  %v2088_v41 = vld [vmem:[#allocation4 + $0xa4] ss:$8 sps:$4 sm:$0xff]   ;;  %v2090_v42 = vld [vmem:[#allocation2 + $0xa0] ss:$8 sps:$4 sm:$0xff]   ;;  %s2098_s12 = scalar_lea.vmem %s2355_s2, %s2084_s29  ;;  %v2102_v44 = vld [vmem:[#allocation2 + $0xb4] ss:$8 sps:$4 sm:$0xff]   ;;  %s399_s23 = scalar_lea.vmem %s2356_s3, %s1496_s20 }
  0x56   : > { %879 = vmatprep.subr.bf16.mxu1 %v2009_v17  ;;  %v2092_v43 = vld [vmem:[#allocation4 + $0xa0] ss:$8 sps:$4 sm:$0xff]   ;;  %v2106_v45 = vld [vmem:[#allocation4 + $0xb4] ss:$8 sps:$4 sm:$0xff]   ;;  %v503_v47 = vld [vmem:[%s2098_s12 + $0x18] sm:$0xf]  ;;  %s403_s11 = scalar_lea.vmem %s2357_s4, %s1496_s20  ;;  %s413_s9 = scalar_lea.vmem %s2358_s5, %s2084_s29 }
  0x57   : > { %v501_v46 = vld [vmem:[%s2098_s12 + $0x8] sm:$0xff]  ;;  %v2112_v48 = vld [vmem:[#allocation2 + $0xb0] ss:$8 sps:$4 sm:$0xff]   ;;  %v2130_v55 = vld [vmem:[#allocation2 + $0xd4] ss:$8 sps:$4 sm:$0xff]   ;;  %s1573_s13 = sshll.u32 %s2421_s24, 4  ;;  %s424_s30 = scalar_lea.vmem %s2359_s6, %s2084_s29 }
  0x58   : > { %677 = vmatpush1.bf16.msra.mxu0 %v2011_v18  ;;  %2390 = vst [vmem:[#allocation8_spill] sm:$0xff] %v2112_v48  ;;  %v2114_v49 = vld [vmem:[#allocation4 + $0xb0] ss:$8 sps:$4 sm:$0xff]   ;;  %v507_v50 = vpack.c.bf16 %v503_v47, %v501_v46  ;;  %v2118_v51 = vld [vmem:[#allocation2 + $0xc4] ss:$8 sps:$4 sm:$0xff]   ;;  %2393 = vst [vmem:[#allocation11_spill] sm:$0xff] %v2130_v55  ;;  %s434_s16 = scalar_lea.vmem %s2360_s7, %s1573_s13 }
  0x59   : > { %880 = vmatpush1.bf16.msra.mxu1 %v2013_v19  ;;  %678 = vmatprep.subr.bf16.mxu0 %v2017_v20  ;;  %2391 = vst [vmem:[#allocation9_spill] sm:$0xff] %v2118_v51  ;;  %v2120_v52 = vld [vmem:[#allocation4 + $0xc4] ss:$8 sps:$4 sm:$0xff]   ;;  %v2124_v53 = vld [vmem:[#allocation2 + $0xc0] ss:$8 sps:$4 sm:$0xff]   ;;  %vm1235_vm2 = vcmask 3072  }
  0x5a   : > { %881 = vmatprep.subr.bf16.mxu1 %v2021_v21  ;;  %700 = vmatprep.mubr.bf16.mxu0 %v507_v50  ;;  %2392 = vst [vmem:[#allocation10_spill] sm:$0xff] %v2124_v53  ;;  %v2126_v54 = vld [vmem:[#allocation4 + $0xc0] ss:$8 sps:$4 sm:$0xff]   ;;  %v2132_v56 = vld [vmem:[#allocation4 + $0xd4] ss:$8 sps:$4 sm:$0xff]  }
  0x5b   : > { %903 = vmatprep.mubr.bf16.mxu1 %v507_v50  ;;  %v2136_v57 = vld [vmem:[#allocation2 + $0xd0] ss:$8 sps:$4 sm:$0xff]   ;;  %v2142_v59 = vld [vmem:[#allocation2 + $0xe4] ss:$8 sps:$4 sm:$0xff]   ;;  %v2148_v61 = vld [vmem:[#allocation2 + $0xe0] ss:$8 sps:$4 sm:$0xff]  }
  0x5c   : > { %679 = vmatpush1.bf16.msra.mxu0 %v2023_v22  ;;  %2394 = vst [vmem:[#allocation12_spill] sm:$0xff] %v2136_v57  ;;  %v2138_v58 = vld [vmem:[#allocation4 + $0xd0] ss:$8 sps:$4 sm:$0xff]   ;;  %2395 = vst [vmem:[#allocation13_spill] sm:$0xff] %v2142_v59  ;;  %v2144_v60 = vld [vmem:[#allocation4 + $0xe4] ss:$8 sps:$4 sm:$0xff]  }
  0x5d   : > { %882 = vmatpush1.bf16.msra.mxu1 %v2027_v23  ;;  %680 = vmatprep.subr.bf16.mxu0 %v2029_v24  ;;  %2396 = vst [vmem:[#allocation14_spill] sm:$0xff] %v2148_v61  ;;  %v2150_v62 = vld [vmem:[#allocation4 + $0xe0] ss:$8 sps:$4 sm:$0xff]   ;;  %v2154_v63 = vld [vmem:[#allocation2 + $0xf4] ss:$8 sps:$4 sm:$0xff]  }
  0x5e   : > { %883 = vmatprep.subr.bf16.mxu1 %v2033_v25  ;;  %2397 = vst [vmem:[#allocation15_spill] sm:$0xff] %v2154_v63  ;;  %v2156_v46 = vld [vmem:[#allocation4 + $0xf4] ss:$8 sps:$4 sm:$0xff]   ;;  %v2158_v47 = vld [vmem:[#allocation2 + $0xf0] ss:$8 sps:$4 sm:$0xff]  }
  0x5f   : > { %2398 = vst [vmem:[#allocation16_spill] sm:$0xff] %v2158_v47  ;;  %v2162_v50 = vld [vmem:[#allocation4 + $0xf0] ss:$8 sps:$4 sm:$0xff]  }
  0x60   : > { %681 = vmatpush1.bf16.msra.mxu0 %v2035_v26 }
  0x61   : > { %884 = vmatpush1.bf16.msra.mxu1 %v2037_v27  ;;  %682 = vmatprep.subr.bf16.mxu0 %v2041_v28 }
  0x62   : > { %885 = vmatprep.subr.bf16.mxu1 %v2045_v29 }
  0x64   : > { %683 = vmatpush1.bf16.msra.mxu0 %v2047_v30 }
  0x65   : > { %886 = vmatpush1.bf16.msra.mxu1 %v2051_v31  ;;  %684 = vmatprep.subr.bf16.mxu0 %v2053_v32 }
  0x66   : > { %887 = vmatprep.subr.bf16.mxu1 %v2058_v33 }
  0x68   : > { %685 = vmatpush1.bf16.msra.mxu0 %v2060_v34 }
  0x69   : > { %888 = vmatpush1.bf16.msra.mxu1 %v2062_v35  ;;  %686 = vmatprep.subr.bf16.mxu0 %v2066_v36 }
  0x6a   : > { %889 = vmatprep.subr.bf16.mxu1 %v2073_v37 }
  0x6c   : > { %687 = vmatpush1.bf16.msra.mxu0 %v2075_v38 }
  0x6d   : > { %890 = vmatpush1.bf16.msra.mxu1 %v2079_v39  ;;  %688 = vmatprep.subr.bf16.mxu0 %v2081_v40 }
  0x6e   : > { %891 = vmatprep.subr.bf16.mxu1 %v2088_v41 }
  0x70   : > { %689 = vmatpush1.bf16.msra.mxu0 %v2090_v42 }
  0x71   : > { %892 = vmatpush1.bf16.msra.mxu1 %v2092_v43  ;;  %690 = vmatprep.subr.bf16.mxu0 %v2102_v44 }
  0x72   : > { %893 = vmatprep.subr.bf16.mxu1 %v2106_v45 }
  0x74   : > { %691 = vmatpush1.bf16.msra.mxu0 %v2112_v48 }
  0x75   : > { %894 = vmatpush1.bf16.msra.mxu1 %v2114_v49  ;;  %692 = vmatprep.subr.bf16.mxu0 %v2118_v51 }
  0x76   : > { %895 = vmatprep.subr.bf16.mxu1 %v2120_v52 }
  0x78   : > { %693 = vmatpush1.bf16.msra.mxu0 %v2124_v53 }
  0x79   : > { %896 = vmatpush1.bf16.msra.mxu1 %v2126_v54  ;;  %694 = vmatprep.subr.bf16.mxu0 %v2130_v55  ;;  %v502_v55 = vld [vmem:[%s2098_s12 + $0x10] sm:$0xf] }
  0x7a   : > { %897 = vmatprep.subr.bf16.mxu1 %v2132_v56 }
  0x7c   : > { %695 = vmatpush1.bf16.msra.mxu0 %v2136_v57  ;;  %v500_v57 = vld [vmem:[%s2098_s12] sm:$0xff] }
  0x7d   : > { %898 = vmatpush1.bf16.msra.mxu1 %v2138_v58  ;;  %696 = vmatprep.subr.bf16.mxu0 %v2142_v59  ;;  %v506_v59 = vpack.c.bf16 %v502_v55, %v500_v57 }
  0x7e   : > { %899 = vmatprep.subr.bf16.mxu1 %v2144_v60 }
  0x80   : > { %697 = vmatpush1.bf16.msra.mxu0 %v2148_v61 }
  0x81   : > { %900 = vmatpush1.bf16.msra.mxu1 %v2150_v62  ;;  %698 = vmatprep.subr.bf16.mxu0 %v2154_v63 }
  0x82   : > { %901 = vmatprep.subr.bf16.mxu1 %v2156_v46 }
  0x84   : > { %699 = vmatpush1.bf16.msra.mxu0 %v2158_v47 }
  0x85   : > { %902 = vmatpush1.bf16.msra.mxu1 %v2162_v50  ;;  %1009 = vmatprep.subr.bf16.mxu0 %v1963_v1 }
  0x86   : > { %1099 = vmatprep.subr.bf16.mxu1 %v1963_v1  ;;  %v937_v1 = vlaneseq }
  0x87   : > { %701 = vmatmul.mubr.bf16.vlgmr.msra.gmra.mrb[0].mxu0 %v506_v59 }
  0x88   : > { %904 = vmatmul.mubr.bf16.vlgmr.msra.gmra.mrb[0].mxu1 %v506_v59  ;;  %1010 = vmatpush1.bf16.msra.mxu0 %v1968_v3 }
  0x89   : > { %1100 = vmatpush1.bf16.msra.mxu1 %v1968_v3  ;;  %1011 = vmatprep.subr.bf16.mxu0 %v1975_v5  ;;  %v938_v3 = vshrl.u32 %v937_v1, 7 }
  0x8a   : > { %1101 = vmatprep.subr.bf16.mxu1 %v1975_v5 }
  0x8b   : > { %v939_v5 = vsub.s32 0, %v938_v3 }
  0x8c   : > { %1012 = vmatpush1.bf16.msra.mxu0 %v1980_v7 }
  0x8d   : > { %1102 = vmatpush1.bf16.msra.mxu1 %v1980_v7  ;;  %1013 = vmatprep.subr.bf16.mxu0 %v1985_v9  ;;  %v504_v7 = vld [vmem:[%s399_s23] sm:$0x3] }
  0x8e   : > { %1103 = vmatprep.subr.bf16.mxu1 %v1985_v9  ;;  %v505_v9 = vld [vmem:[%s403_s11] sm:$0x3] }
  0x90   : > { %1014 = vmatpush1.bf16.msra.mxu0 %v1989_v11 }
  0x91   : > { %1104 = vmatpush1.bf16.msra.mxu1 %v1989_v11  ;;  %1015 = vmatprep.subr.bf16.mxu0 %v1997_v13  ;;  %v943_v11 = vsub.s32 1, %v938_v3 }
  0x92   : > { %1105 = vmatprep.subr.bf16.mxu1 %v1997_v13  ;;  %v1189_v13 = vmul.f32 %v504_v7, %v504_v7 }
  0x94   : > { %1016 = vmatpush1.bf16.msra.mxu0 %v2003_v15 }
  0x95   : > { %1106 = vmatpush1.bf16.msra.mxu1 %v2003_v15  ;;  %1017 = vmatprep.subr.bf16.mxu0 %v2009_v17  ;;  %v935_v15 = vmul.f32 %v505_v9, %v505_v9 }
  0x96   : > { %1107 = vmatprep.subr.bf16.mxu1 %v2009_v17  ;;  %v967_v17 = vrot.slane %v504_v7, %v939_v5 }
  0x98   : > { %1018 = vmatpush1.bf16.msra.mxu0 %v2013_v19 }
  0x99   : > { %1108 = vmatpush1.bf16.msra.mxu1 %v2013_v19  ;;  %1019 = vmatprep.subr.bf16.mxu0 %v2021_v21  ;;  %v990_v19 = vrot.slane %v505_v9, %v939_v5 }
  0x9a   : > { %1109 = vmatprep.subr.bf16.mxu1 %v2021_v21  ;;  %v994_v21 = vrot.slane %v505_v9, %v943_v11 }
  0x9c   : > { %1020 = vmatpush1.bf16.msra.mxu0 %v2027_v23 }
  0x9d   : > { %1110 = vmatpush1.bf16.msra.mxu1 %v2027_v23  ;;  %1021 = vmatprep.subr.bf16.mxu0 %v2033_v25 }
  0x9e   : > { %1111 = vmatprep.subr.bf16.mxu1 %v2033_v25 }
  0xa0   : > { %1022 = vmatpush1.bf16.msra.mxu0 %v2037_v27 }
  0xa1   : > { %1112 = vmatpush1.bf16.msra.mxu1 %v2037_v27  ;;  %1023 = vmatprep.subr.bf16.mxu0 %v2045_v29  ;;  %v1194_v27 = vrot.slane %v1189_v13, %v939_v5 }
  0xa2   : > { %1113 = vmatprep.subr.bf16.mxu1 %v2045_v29  ;;  %v1198_v29 = vrot.slane %v1189_v13, %v943_v11 }
  0xa4   : > { %1024 = vmatpush1.bf16.msra.mxu0 %v2051_v31 }
  0xa5   : > { %1114 = vmatpush1.bf16.msra.mxu1 %v2051_v31  ;;  %1025 = vmatprep.subr.bf16.mxu0 %v2058_v33  ;;  %v940_v31 = vrot.slane %v935_v15, %v939_v5 }
  0xa6   : > { %1115 = vmatprep.subr.bf16.mxu1 %v2058_v33  ;;  %v944_v33 = vrot.slane %v935_v15, %v943_v11 }
  0xa8   : > { %1026 = vmatpush1.bf16.msra.mxu0 %v2062_v35 }
  0xa9   : > { %1116 = vmatpush1.bf16.msra.mxu1 %v2062_v35  ;;  %1027 = vmatprep.subr.bf16.mxu0 %v2073_v37 }
  0xaa   : > { %1117 = vmatprep.subr.bf16.mxu1 %v2073_v37 }
  0xac   : > { %1028 = vmatpush1.bf16.msra.mxu0 %v2079_v39 }
  0xad   : > { %1118 = vmatpush1.bf16.msra.mxu1 %v2079_v39  ;;  %1029 = vmatprep.subr.bf16.mxu0 %v2088_v41 }
  0xae   : > { %1119 = vmatprep.subr.bf16.mxu1 %v2088_v41 }
  0xb0   : > { %1030 = vmatpush1.bf16.msra.mxu0 %v2092_v43 }
  0xb1   : > { %1120 = vmatpush1.bf16.msra.mxu1 %v2092_v43  ;;  %1031 = vmatprep.subr.bf16.mxu0 %v2106_v45 }
  0xb2   : > { %1121 = vmatprep.subr.bf16.mxu1 %v2106_v45 }
  0xb4   : > { %1032 = vmatpush1.bf16.msra.mxu0 %v2114_v49 }
  0xb5   : > { %1122 = vmatpush1.bf16.msra.mxu1 %v2114_v49  ;;  %1033 = vmatprep.subr.bf16.mxu0 %v2120_v52 }
  0xb6   : > { %1123 = vmatprep.subr.bf16.mxu1 %v2120_v52 }
  0xb8   : > { %1034 = vmatpush1.bf16.msra.mxu0 %v2126_v54 }
  0xb9   : > { %1124 = vmatpush1.bf16.msra.mxu1 %v2126_v54  ;;  %1035 = vmatprep.subr.bf16.mxu0 %v2132_v56 }
  0xba   : > { %1125 = vmatprep.subr.bf16.mxu1 %v2132_v56 }
  0xbc   : > { %1036 = vmatpush1.bf16.msra.mxu0 %v2138_v58 }
  0xbd   : > { %1126 = vmatpush1.bf16.msra.mxu1 %v2138_v58  ;;  %1037 = vmatprep.subr.bf16.mxu0 %v2144_v60 }
  0xbe   : > { %1127 = vmatprep.subr.bf16.mxu1 %v2144_v60 }
  0xc0   : > { %1038 = vmatpush1.bf16.msra.mxu0 %v2150_v62 }
  0xc1   : > { %1128 = vmatpush1.bf16.msra.mxu1 %v2150_v62  ;;  %1039 = vmatprep.subr.bf16.mxu0 %v2156_v46 }
  0xc2   : > { %1129 = vmatprep.subr.bf16.mxu1 %v2156_v46 }
  0xc4   : > { %1040 = vmatpush1.bf16.msra.mxu0 %v2162_v50 }
  0xc5   : > { %1130 = vmatpush1.bf16.msra.mxu1 %v2162_v50  ;;  %1052 = vmatprep.subr.bf16.mxu0 %v1961_v0 }
  0xc6   : > { %1142 = vmatprep.subr.bf16.mxu1 %v1961_v0  ;;  %v971_v0 = vrot.slane %v504_v7, %v943_v11 }
 0x15a   : > { %v702_v23 = vpop.f32.mrb[0].mxu0 }
 0x15b   : > { %v905_v25 = vpop.f32.mrb[0].mxu1  ;;  %v914_v35 = vmul.f32 %v702_v23, %v702_v23  ;;  %v2243_v37 = vmul.f32 %v967_v17, %v702_v23  ;;  %v2245_v39 = vmul.f32 %v990_v19, %v702_v23  ;;  %v704_v43 = vpop.f32.mrb[1].mxu0 }
 0x15c   : > { %v918_v41 = vmul.f32 %v905_v25, %v905_v25  ;;  %v907_v45 = vpop.f32.mrb[1].mxu1  ;;  %v980_v49 = vmul.f32 %v967_v17, %v905_v25  ;;  %v1003_v52 = vmul.f32 %v990_v19, %v905_v25  ;;  %v915_v54 = vmul.f32 %v704_v43, %v704_v43  ;;  %v706_v56 = vpop.f32.mrb[2].mxu0 }
 0x15d   : > { %2399 = vst [vmem:[#allocation17_spill] sm:$0xff] %v2243_v37  ;;  %2400 = vst [vmem:[#allocation18_spill] sm:$0xff] %v2245_v39  ;;  %v2247_v55 = vmul.f32 %v971_v0, %v704_v43  ;;  %v909_v57 = vpop.f32.mrb[2].mxu1  ;;  %v998_v59 = vmul.f32 %v994_v21, %v704_v43  ;;  %v919_v60 = vmul.f32 %v907_v45, %v907_v45  ;;  %v708_v46 = vpop.f32.mrb[3].mxu0 }
 0x15e   : > { %v922_v58 = vadd.f32 %v918_v41, %v914_v35  ;;  %v981_v62 = vmul.f32 %v971_v0, %v907_v45  ;;  %v911_v50 = vpop.f32.mrb[3].mxu1  ;;  %v1004_v1 = vmul.f32 %v994_v21, %v907_v45  ;;  %v916_v3 = vmul.f32 %v706_v56, %v706_v56 }
 0x15f   : > { %v2249_v5 = vmul.f32 %v967_v17, %v706_v56  ;;  %v2251_v7 = vmul.f32 %v990_v19, %v706_v56  ;;  %v923_v9 = vadd.f32 %v919_v60, %v915_v54  ;;  %v920_v11 = vmul.f32 %v909_v57, %v909_v57 }
 0x160   : > { %v982_v13 = vmul.f32 %v967_v17, %v909_v57  ;;  %v1005_v15 = vmul.f32 %v990_v19, %v909_v57  ;;  %v917_v35 = vmul.f32 %v708_v46, %v708_v46  ;;  %v977_v41 = vmul.f32 %v971_v0, %v708_v46 }
 0x161   : > { %2401 = vst [vmem:[#allocation19_spill] sm:$0xff] %v2249_v5  ;;  %v924_v43 = vadd.f32 %v920_v11, %v916_v3  ;;  %v1000_v63 = vmul.f32 %v994_v21, %v708_v46  ;;  %v921_v61 = vmul.f32 %v911_v50, %v911_v50  ;;  %v983_v53 = vmul.f32 %v971_v0, %v911_v50 }
 0x162   : > { %v984_v47 = vpack.c.bf16 %v982_v13, %v980_v49  ;;  %v1007_v45 = vpack.c.bf16 %v1005_v15, %v1003_v52  ;;  %v1006_v56 = vmul.f32 %v994_v21, %v911_v50  ;;  %v1201_v51 = vmul.f32 %v1194_v27, %v922_v58 }
 0x163   : > { %v1202_v54 = vmul.f32 %v1198_v29, %v923_v9  ;;  %v947_v60 = vmul.f32 %v940_v31, %v922_v58  ;;  %v948_v17 = vmul.f32 %v944_v33, %v923_v9  ;;  %v1203_v19 = vmul.f32 %v1194_v27, %v924_v43 }
 0x164   : > { %v925_v57 = vadd.f32 %v921_v61, %v917_v35  ;;  %v985_v48 = vpack.c.bf16 %v983_v53, %v981_v62  ;;  %v1008_v23 = vpack.c.bf16 %v1006_v56, %v1004_v1  ;;  %v949_v37 = vmul.f32 %v940_v31, %v924_v43 }
 0x165   : > { %v1205_v5 = vadd.f32 %v1202_v54, %v1201_v51  ;;  %v951_v25 = vadd.f32 %v948_v17, %v947_v60  ;;  %v1208_v39 = vsel %vm929_vm0, %v1203_v19, 0.0  ;;  %v926_v3 = vadd.f32 %v923_v9, %v922_v58 }
 0x166   : > { %1041 = vmatprep.mubr.bf16.mxu0 %v985_v48  ;;  %1131 = vmatprep.mubr.bf16.mxu1 %v1008_v23  ;;  %v1204_v49 = vmul.f32 %v1198_v29, %v925_v57  ;;  %v950_v52 = vmul.f32 %v944_v33, %v925_v57  ;;  %v954_v0 = vsel %vm929_vm0, %v949_v37, 0.0  ;;  %v930_v21 = vsel %vm929_vm0, %v924_v43, 0.0 }
 0x167   : > { %1042 = vmatmul.mubr.bf16.vlgmr.msra.gmra.mrb[4].mxu0 %v984_v47  ;;  %1132 = vmatmul.mubr.bf16.vlgmr.msra.gmra.mrb[4].mxu1 %v1007_v45  ;;  %v931_v61 = vsel %vm929_vm0, %v925_v57, 0.0  ;;  %v979_v53 = vpack.c.bf16 %v977_v41, %v2247_v55  ;;  %v1002_v27 = vpack.c.bf16 %v1000_v63, %v998_v59 }
 0x168   : > { %1053 = vmatpush1.bf16.msra.mxu0 %v1966_v2  ;;  %1143 = vmatpush1.bf16.msra.mxu1 %v1966_v2  ;;  %v1209_v48 = vsel %vm929_vm0, %v1204_v49, 0.0  ;;  %v955_v51 = vsel %vm929_vm0, %v950_v52, 0.0  ;;  %v932_v29 = vadd.f32 %v931_v61, %v930_v21  ;;  %v2402_v2 = vld [vmem:[#allocation8_spill] sm:$0xff] }
 0x169   : > { %1206 = vadd.xlane.f32.xlu1 %v1205_v5  ;;  %952 = vadd.xlane.f32.xlu0 %v951_v25  ;;  %v1210_v31 = vadd.f32 %v1209_v48, %v1208_v39  ;;  %v956_v33 = vadd.f32 %v955_v51, %v954_v0 }
 0x16a   : > { %1054 = vmatprep.subr.bf16.mxu0 %v1971_v4  ;;  %1144 = vmatprep.subr.bf16.mxu1 %v1971_v4  ;;  %v2403_v4 = vld [vmem:[#allocation9_spill] sm:$0xff] }
 0x16b   : > { %1084 = vmatprep.mubr.bf16.mxu0 %v979_v53  ;;  %1174 = vmatprep.mubr.bf16.mxu1 %v1002_v27 }
 0x16c   : > { %1055 = vmatpush1.bf16.msra.mxu0 %v1977_v6  ;;  %1145 = vmatpush1.bf16.msra.mxu1 %v1977_v6  ;;  %v2404_v6 = vld [vmem:[#allocation10_spill] sm:$0xff] }
 0x16d   : > { %1211 = vadd.xlane.f32.xlu1 %v1210_v31  ;;  %957 = vadd.xlane.f32.xlu0 %v956_v33 }
 0x16e   : > { %1056 = vmatprep.subr.bf16.mxu0 %v1983_v8  ;;  %1146 = vmatprep.subr.bf16.mxu1 %v1983_v8  ;;  %v2405_v8 = vld [vmem:[#allocation11_spill] sm:$0xff] }
 0x170   : > { %1057 = vmatpush1.bf16.msra.mxu0 %v1987_v10  ;;  %1147 = vmatpush1.bf16.msra.mxu1 %v1987_v10  ;;  %v2406_v10 = vld [vmem:[#allocation12_spill] sm:$0xff] }
 0x171   : > { %927 = vadd.xlane.f32.xlu0 %v926_v3  ;;  %933 = vadd.xlane.f32.xlu1 %v932_v29 }
 0x172   : > { %1058 = vmatprep.subr.bf16.mxu0 %v1993_v12  ;;  %1148 = vmatprep.subr.bf16.mxu1 %v1993_v12  ;;  %v2407_v12 = vld [vmem:[#allocation13_spill] sm:$0xff] }
 0x174   : > { %1059 = vmatpush1.bf16.msra.mxu0 %v1999_v14  ;;  %1149 = vmatpush1.bf16.msra.mxu1 %v1999_v14  ;;  %v2408_v14 = vld [vmem:[#allocation14_spill] sm:$0xff] }
 0x175   : > { %1060 = vmatprep.subr.bf16.mxu0 %v2005_v16  ;;  %1150 = vmatprep.subr.bf16.mxu1 %v2005_v16  ;;  %v2409_v16 = vld [vmem:[#allocation15_spill] sm:$0xff] }
 0x178   : > { %1061 = vmatpush1.bf16.msra.mxu0 %v2011_v18  ;;  %1151 = vmatpush1.bf16.msra.mxu1 %v2011_v18  ;;  %v2410_v18 = vld [vmem:[#allocation16_spill] sm:$0xff] }
 0x179   : > { %1062 = vmatprep.subr.bf16.mxu0 %v2017_v20  ;;  %1152 = vmatprep.subr.bf16.mxu1 %v2017_v20  ;;  %v2411_v20 = vld [vmem:[#allocation19_spill] sm:$0xff] }
 0x17c   : > { %1063 = vmatpush1.bf16.msra.mxu0 %v2023_v22  ;;  %1153 = vmatpush1.bf16.msra.mxu1 %v2023_v22  ;;  %v2412_v22 = vld [vmem:[#allocation17_spill] sm:$0xff] }
 0x17d   : > { %1064 = vmatprep.subr.bf16.mxu0 %v2029_v24  ;;  %1154 = vmatprep.subr.bf16.mxu1 %v2029_v24  ;;  %v2413_v24 = vpack.c.bf16 %v2411_v20, %v2412_v22 }
 0x180   : > { %1065 = vmatpush1.bf16.msra.mxu0 %v2035_v26  ;;  %1155 = vmatpush1.bf16.msra.mxu1 %v2035_v26  ;;  %v2414_v26 = vld [vmem:[#allocation18_spill] sm:$0xff] }
 0x181   : > { %1066 = vmatprep.subr.bf16.mxu0 %v2041_v28  ;;  %1156 = vmatprep.subr.bf16.mxu1 %v2041_v28  ;;  %v2415_v28 = vpack.c.bf16 %v2251_v7, %v2414_v26 }
 0x184   : > { %1067 = vmatpush1.bf16.msra.mxu0 %v2047_v30  ;;  %1157 = vmatpush1.bf16.msra.mxu1 %v2047_v30 }
 0x185   : > { %1068 = vmatprep.subr.bf16.mxu0 %v2053_v32  ;;  %1158 = vmatprep.subr.bf16.mxu1 %v2053_v32 }
 0x188   : > { %1069 = vmatpush1.bf16.msra.mxu0 %v2060_v34  ;;  %1159 = vmatpush1.bf16.msra.mxu1 %v2060_v34 }
 0x189   : > { %1070 = vmatprep.subr.bf16.mxu0 %v2066_v36  ;;  %1160 = vmatprep.subr.bf16.mxu1 %v2066_v36 }
 0x18c   : > { %1071 = vmatpush1.bf16.msra.mxu0 %v2075_v38  ;;  %1161 = vmatpush1.bf16.msra.mxu1 %v2075_v38 }
 0x18d   : > { %1072 = vmatprep.subr.bf16.mxu0 %v2081_v40  ;;  %1162 = vmatprep.subr.bf16.mxu1 %v2081_v40 }
 0x190   : > { %1073 = vmatpush1.bf16.msra.mxu0 %v2090_v42  ;;  %1163 = vmatpush1.bf16.msra.mxu1 %v2090_v42 }
 0x191   : > { %1074 = vmatprep.subr.bf16.mxu0 %v2102_v44  ;;  %1164 = vmatprep.subr.bf16.mxu1 %v2102_v44 }
 0x194   : > { %1075 = vmatpush1.bf16.msra.mxu0 %v2402_v2  ;;  %1165 = vmatpush1.bf16.msra.mxu1 %v2402_v2 }
 0x195   : > { %1076 = vmatprep.subr.bf16.mxu0 %v2403_v4  ;;  %1166 = vmatprep.subr.bf16.mxu1 %v2403_v4 }
 0x198   : > { %1077 = vmatpush1.bf16.msra.mxu0 %v2404_v6  ;;  %1167 = vmatpush1.bf16.msra.mxu1 %v2404_v6 }
 0x199   : > { %1078 = vmatprep.subr.bf16.mxu0 %v2405_v8  ;;  %1168 = vmatprep.subr.bf16.mxu1 %v2405_v8 }
 0x19c   : > { %1079 = vmatpush1.bf16.msra.mxu0 %v2406_v10  ;;  %1169 = vmatpush1.bf16.msra.mxu1 %v2406_v10 }
 0x19d   : > { %1080 = vmatprep.subr.bf16.mxu0 %v2407_v12  ;;  %1170 = vmatprep.subr.bf16.mxu1 %v2407_v12 }
 0x1a0   : > { %1081 = vmatpush1.bf16.msra.mxu0 %v2408_v14  ;;  %1171 = vmatpush1.bf16.msra.mxu1 %v2408_v14 }
 0x1a1   : > { %1082 = vmatprep.subr.bf16.mxu0 %v2409_v16  ;;  %1172 = vmatprep.subr.bf16.mxu1 %v2409_v16 }
 0x1a4   : > { %1083 = vmatpush1.bf16.msra.mxu0 %v2410_v18  ;;  %1173 = vmatpush1.bf16.msra.mxu1 %v2410_v18 }
 0x1a7   : > { %1085 = vmatmul.mubr.bf16.vlgmr.msra.gmra.mrb[4].mxu0 %v2413_v24  ;;  %1175 = vmatmul.mubr.bf16.vlgmr.msra.gmra.mrb[4].mxu1 %v2415_v28 }
 0x1f6   : > { %v1207_v30 = vpop.xlane.xlu1 %1206  ;;  %v953_v32 = vpop.xlane.xlu0 %952 }
 0x1f7   : > { %1725 = vrcp.f32 %v1207_v30 }
 0x1f8   : > { %1727 = vrcp.f32 %v953_v32 }
 0x1fa   : > { %v1212_v34 = vpop.xlane.xlu1 %1211  ;;  %v958_v36 = vpop.xlane.xlu0 %957 }
 0x1fb   : > { %1729 = vrcp.f32 %v1212_v34 }
 0x1fc   : > { %1731 = vrcp.f32 %v958_v36 }
 0x1fe   : > { %v928_v40 = vpop.xlane.xlu0 %927  ;;  %v934_v37 = vpop.xlane.xlu1 %933 }
 0x201   : > { %v1726_v38 = vpop.eup %1725 }
 0x202   : > { %v1728_v42 = vpop.eup %1727  ;;  %v1214_v44 = vmul.f32 %v1726_v38, %v928_v40 }
 0x203   : > { %v960_v63 = vmul.f32 %v1728_v42, %v928_v40 }
 0x205   : > { %v1730_v47 = vpop.eup %1729  ;;  %1234 = vst.msk [vmem:[%s434_s16] sm:$0xff] %vm1233_vm1, %v960_v63 }
 0x206   : > { %v1732_v39 = vpop.eup %1731  ;;  %v1216_v55 = vmul.f32 %v1730_v47, %v934_v37 }
 0x207   : > { %v962_v58 = vmul.f32 %v1732_v39, %v934_v37 }
 0x209   : > { %1236 = vst.msk [vmem:[%s434_s16 + $0x8] sm:$0xf] %vm1235_vm2, %v962_v58 }
 0x27a   : > { %v1086_v59 = vpop.f32.mrb[4].mxu0  ;;  %v1176_v62 = vpop.f32.mrb[4].mxu1 }
 0x27b   : > { %v1095_v46 = vmul.f32 0.00390625, %v1086_v59  ;;  %v1185_v50 = vmul.f32 0.00390625, %v1176_v62  ;;  %v1088_v1 = vpop.f32.mrb[5].mxu0  ;;  %v1178_v5 = vpop.f32.mrb[5].mxu1 }
 0x27c   : > { %v1096_v7 = vmul.f32 0.00390625, %v1088_v1  ;;  %v1186_v9 = vmul.f32 0.00390625, %v1178_v5  ;;  %v1090_v11 = vpop.f32.mrb[6].mxu0  ;;  %v1180_v13 = vpop.f32.mrb[6].mxu1 }
 0x27d   : > { %v1217_v15 = vmul.f32 %v1214_v44, %v1095_v46  ;;  %v1221_v23 = vmul.f32 %v1185_v50, %v960_v63  ;;  %v1097_v25 = vmul.f32 0.00390625, %v1090_v11  ;;  %v1187_v35 = vmul.f32 0.00390625, %v1180_v13  ;;  %v1092_v41 = vpop.f32.mrb[7].mxu0  ;;  %v1182_v43 = vpop.f32.mrb[7].mxu1 }
 0x27e   : > { %v1218_v45 = vmul.f32 %v1214_v44, %v1096_v7  ;;  %v1222_v56 = vmul.f32 %v1186_v9, %v960_v63  ;;  %v1098_v54 = vmul.f32 0.00390625, %v1092_v41  ;;  %v1188_v60 = vmul.f32 0.00390625, %v1182_v43 }
 0x27f   : > { %1225 = vst [vmem:[%s413_s9] sm:$0xff] %v1217_v15  ;;  %1229 = vst [vmem:[%s424_s30] sm:$0xff] %v1221_v23  ;;  %v1219_v17 = vmul.f32 %v1216_v55, %v1097_v25  ;;  %v1223_v19 = vmul.f32 %v1187_v35, %v962_v58 }
 0x280   : > { %1226 = vst [vmem:[%s413_s9 + $0x8] sm:$0xff] %v1218_v45  ;;  %1230 = vst [vmem:[%s424_s30 + $0x8] sm:$0xff] %v1222_v56  ;;  %v1220_v57 = vmul.f32 %v1216_v55, %v1098_v54  ;;  %v1224_v3 = vmul.f32 %v1188_v60, %v962_v58 }
 0x281   : > { %1227 = vst [vmem:[%s413_s9 + $0x10] sm:$0xf] %v1219_v17  ;;  %1231 = vst [vmem:[%s424_s30 + $0x10] sm:$0xf] %v1223_v19 }
 0x282   : > { %1228 = vst [vmem:[%s413_s9 + $0x18] sm:$0xf] %v1220_v57  ;;  %1232 = vst [vmem:[%s424_s30 + $0x18] sm:$0xf] %v1224_v3 }
 0x283 PF: > { %s20_s26 = sadd.s32 1, %s1819_s26   ;;  %s2416_s24 = smov %s1815_s25 }
 0x284   : > { %p17_p8 = scmp.ge.s32.totalorder %s20_s26, 4   ;;  %s2417_s25 = smov %s2419_s28 }
 0x286   :  { %19 = sbr.rel (!%p17_p8) target bundleno = 3 (0x3), region = 109 }
 0x28d   :  { %1321 = vsyncpa [#allocation3], 1 }
 0x28e   :  { %1323 = vsyncpa [#allocation3 + $0x1], 1 }
 0x28f   :  { %1324 = vsyncpa [#allocation5], 1 }

</bundles_post_ra>
